<compile_context>
chip_gen: v6e
topology: v6e:2x2x1
jax: 0.10.0
libtpu: 0.0.40
codegen_flags: <defaults>
</compile_context>

<pallas_src>
import functools

import jax
import jax.numpy as jnp
from jax.experimental import pallas as pl
from jax.experimental.pallas import tpu as pltpu


def _round_up(x, m):
    return ((x + m - 1) // m) * m


@functools.lru_cache(maxsize=1)
def _vmem_limit_bytes():
    # Generation-aware VMEM budget (v5e/v6e: 128 MiB, v7x: 64 MiB physical).
    try:
        cap = getattr(pltpu.get_tpu_info(), "vmem_capacity_bytes", None)
        if cap:
            return int(0.7 * cap)
    except Exception:
        pass
    return 64 * 1024 * 1024


# ----------------------------------------------------------------------------
# Per-branch kernel: grid=(2,) over {exec, file}, fully independent ("parallel").
# ----------------------------------------------------------------------------
def _branch_kernel(x_ref, adj_ref, w1_ref, b1_ref, w2_ref, b2_ref, w3_ref, b3_ref,
                   waz_ref, wax_ref, ba_ref, va_ref, bva_ref,
                   out_ref, *, score_lane):
    adj = adj_ref[...]            # (N, N) bf16
    x = x_ref[...]                # (N, F) bf16

    def gcn_layer(h_bf16, w_ref, bias_ref):
        # adj @ (h @ W) == (adj @ h) @ W ; pick the order that contracts the
        # N x N matmul against the smaller width (static choice).
        fin, fout = h_bf16.shape[1], w_ref.shape[1]
        if fin <= fout:
            t = jnp.dot(adj, h_bf16, preferred_element_type=jnp.float32)
            out = jnp.dot(t.astype(jnp.bfloat16), w_ref[...],
                          preferred_element_type=jnp.float32)
        else:
            t = jnp.dot(h_bf16, w_ref[...], preferred_element_type=jnp.float32)
            out = jnp.dot(adj, t.astype(jnp.bfloat16),
                          preferred_element_type=jnp.float32)
        return out + bias_ref[...]                        # f32

    # layer 1 + ReLU (dropout p=0.4 -> identity in eval)
    h1 = jnp.maximum(gcn_layer(x, w1_ref, b1_ref), 0.0)
    # layer 2 + ReLU
    h2 = jnp.maximum(gcn_layer(h1.astype(jnp.bfloat16), w2_ref, b2_ref), 0.0)
    # layer 3 (linear); W3/b3 are lane-padded to PAD lanes -> z_b is (N, PAD) f32
    # with exact zeros in lanes >= hid3.
    z_b = gcn_layer(h2.astype(jnp.bfloat16), w3_ref, b3_ref)

    # per-branch attention score: tanh(z @ Wa_z + x @ Wa_x + ba) . va + bva
    # (Wa_z is zero-padded to PAD rows, matching z_b's padded lanes -> exact.)
    pre = (jnp.dot(z_b.astype(jnp.bfloat16), waz_ref[...],
                   preferred_element_type=jnp.float32)
           + jnp.dot(x, wax_ref[...], preferred_element_type=jnp.float32)
           + ba_ref[...])
    h_att = jnp.tanh(pre)                                 # (N, d_att) f32 (EUP)
    # 1-column "matmul" done as VPU multiply + lane reduction (XLU)
    s_b = jnp.sum(h_att * va_ref[...], axis=-1, keepdims=True) + bva_ref[...]

    # lane-dense packed slab: lanes [0, hid3) = z_b, lane hid3 = score, rest 0
    lane = jax.lax.broadcasted_iota(jnp.int32, out_ref.shape, 1)
    out_ref[...] = jnp.where(lane == score_lane, s_b, z_b).astype(out_ref.dtype)


# ----------------------------------------------------------------------------
# One-time preparation (HOISTED out of the per-call hot path)
# ----------------------------------------------------------------------------
def prepare_params(params):
    """Stack per-branch weights, cast to bf16, lane-pad layer-3 / split Wa.  Run once."""
    bf = jnp.bfloat16
    hid3 = params["exec3_w"].shape[1]
    pad = max(128, _round_up(hid3 + 1, 128))   # slab width: z lanes + 1 score lane

    def stack(name):
        return jnp.stack([params["exec" + name], params["file" + name]])

    w1 = stack("1_w").astype(bf)
    b1 = stack("1_b").astype(jnp.float32)
    w2 = stack("2_w").astype(bf)
    b2 = stack("2_b").astype(jnp.float32)
    # lane-pad layer-3 output to `pad` columns (extra columns are exactly zero)
    w3 = jnp.pad(stack("3_w"), ((0, 0), (0, 0), (0, pad - hid3))).astype(bf)
    b3 = jnp.pad(stack("3_b"), ((0, 0), (0, 0), (0, pad - hid3))).astype(jnp.float32)
    # split Wa so the kernel never concatenates along the lane axis; zero-pad the
    # z-half's contraction rows to match the padded z lanes (exact).
    wa_z = jnp.pad(params["att_w"][:hid3], ((0, pad - hid3), (0, 0))).astype(bf)
    wa_x = params["att_w"][hid3:].astype(bf)
    ba = params["att_b"].astype(jnp.float32)        # (1, d_att)
    va = params["att_v"].T.astype(jnp.float32)      # (1, d_att)
    bva = params["att_vb"].astype(jnp.float32)      # (1, 1)
    return dict(w1=w1, b1=b1, w2=w2, b2=b2, w3=w3, b3=b3,
                wa_z=wa_z, wa_x=wa_x, ba=ba, va=va, bva=bva)


def prepare_graph_inputs(exec_x, exec_adj, file_x, file_adj):
    """Stack + bf16-cast the graph inputs once (cache if adj is reused across calls)."""
    assert exec_x.shape[0] == file_x.shape[0], "attention fusion requires equal node counts"
    bf = jnp.bfloat16
    x_all = jnp.stack([exec_x, file_x]).astype(bf)        # (2, N, F)
    adj_all = jnp.stack([exec_adj, file_adj]).astype(bf)  # (2, N, N)
    # TODO(synk): optionally quantize adj here (int8 on v5e/v6e, fp8 on v7x) with a
    #             per-row scale folded into the post-matmul rescale for large N.
    return x_all, adj_all


# ----------------------------------------------------------------------------
# Hot path: single pallas_call over the 2 branches + tiny JAX softmax combine
# ----------------------------------------------------------------------------
@jax.jit
def encoder_atten_3layer_prepared(prep, x_all, adj_all):
    n, feat = x_all.shape[1], x_all.shape[2]
    hid1 = prep["w1"].shape[2]
    hid2 = prep["w2"].shape[2]
    pad = prep["w3"].shape[2]
    d_att = prep["wa_x"].shape[1]
    hid3 = d_att - feat            # AttentionLayer(gcn_hid3 + gcn_feature, ...)

    def branch3(shp):   # per-branch block: squeeze leading branch dim
        return pl.BlockSpec((None,) + shp, lambda b: (b,) + (0,) * len(shp))

    def shared2(shp):   # shared 2-D block; same block index every step -> no re-DMA
        return pl.BlockSpec(shp, lambda b: (0, 0))

    grid_spec = pltpu.PrefetchScalarGridSpec(
        num_scalar_prefetch=0,
        grid=(2,),
        in_specs=[
            branch3((n, feat)),                    # x
            branch3((n, n)),                       # adj
            branch3((feat, hid1)), branch3((1, hid1)),
            branch3((hid1, hid2)), branch3((1, hid2)),
            branch3((hid2, pad)), branch3((1, pad)),
            shared2((pad, d_att)),                 # wa_z (padded rows)
            shared2((feat, d_att)),                # wa_x
            shared2((1, d_att)),                   # ba
            shared2((1, d_att)),                   # va
            shared2((1, 1)),                       # bva
        ],
        out_specs=branch3((n, pad)),               # lane-dense per-branch slab
    )

    slabs = pl.pallas_call(
        functools.partial(_branch_kernel, score_lane=hid3),
        out_shape=jax.ShapeDtypeStruct((2, n, pad), jnp.float32),
        grid_spec=grid_spec,
        compiler_params=pltpu.CompilerParams(
            dimension_semantics=("parallel",),     # branches independent; 2-TC on v7x
            vmem_limit_bytes=_vmem_limit_bytes()),
    )(x_all, adj_all, prep["w1"], prep["b1"], prep["w2"], prep["b2"],
      prep["w3"], prep["b3"], prep["wa_z"], prep["wa_x"], prep["ba"],
      prep["va"], prep["bva"])

    # Tiny O(N*hid3) combine hoisted out of the kernel (exact f32 softmax).
    z_exec = slabs[0, :, :hid3]
    z_file = slabs[1, :, :hid3]
    scores = slabs[:, :, hid3]                     # (2, N)
    atten = jax.nn.softmax(scores.T, axis=1)       # (N, 2)
    z = atten[:, 0:1] * z_exec + atten[:, 1:2] * z_file
    return z, atten, z_exec, z_file


def encoder_atten_3layer(params, exec_x, exec_adj, file_x, file_adj):
    """Convenience path matching the PyTorch signature.  For the hot loop, call
    prepare_params()/prepare_graph_inputs() once and reuse with
    encoder_atten_3layer_prepared()."""
    prep = prepare_params(params)
    x_all, adj_all = prepare_graph_inputs(exec_x, exec_adj, file_x, file_adj)
    return encoder_atten_3layer_prepared(prep, x_all, adj_all)


# ----------------------------------------------------------------------------
# Parameter construction (GraphConvolution-style uniform init)
# ----------------------------------------------------------------------------
def init_params(key, gcn_feature, gcn_hid1, gcn_hid2, gcn_hid3):
    dims = [
        ("exec1", gcn_feature, gcn_hid1), ("exec2", gcn_hid1, gcn_hid2),
        ("exec3", gcn_hid2, gcn_hid3),
        ("file1", gcn_feature, gcn_hid1), ("file2", gcn_hid1, gcn_hid2),
        ("file3", gcn_hid2, gcn_hid3),
    ]
    params = {}
    keys = jax.random.split(key, 2 * len(dims) + 4)
    i = 0
    for name, fin, fout in dims:
        stdv = 1.0 / jnp.sqrt(fout)
        params[name + "_w"] = jax.random.uniform(
            keys[i], (fin, fout), jnp.float32, -stdv, stdv); i += 1
        params[name + "_b"] = jax.random.uniform(
            keys[i], (1, fout), jnp.float32, -stdv, stdv); i += 1
    d_att = gcn_hid3 + gcn_feature
    stdv = 1.0 / jnp.sqrt(d_att)
    params["att_w"] = jax.random.uniform(keys[i], (d_att, d_att), jnp.float32, -stdv, stdv); i += 1
    params["att_b"] = jax.random.uniform(keys[i], (1, d_att), jnp.float32, -stdv, stdv); i += 1
    params["att_v"] = jax.random.uniform(keys[i], (d_att, 1), jnp.float32, -stdv, stdv); i += 1
    params["att_vb"] = jax.random.uniform(keys[i], (1, 1), jnp.float32, -stdv, stdv); i += 1
    return params


# ----------------------------------------------------------------------------
# Pure-JAX f32 reference (sanity check)
# ----------------------------------------------------------------------------
def _ref_forward(params, exec_x, exec_adj, file_x, file_adj):
    def gcn(x, adj, w, b):
        return adj @ (x @ w) + b

    def enc(x, adj, p, pfx):
        h = jax.nn.relu(gcn(x, adj, p[pfx + "1_w"], p[pfx + "1_b"]))
        h = jax.nn.relu(gcn(h, adj, p[pfx + "2_w"], p[pfx + "2_b"]))
        return gcn(h, adj, p[pfx + "3_w"], p[pfx + "3_b"])

    z_exec = enc(exec_x, exec_adj, params, "exec")
    z_file = enc(file_x, file_adj, params, "file")
    cat_e = jnp.concatenate([z_exec, exec_x], axis=1)
    cat_f = jnp.concatenate([z_file, file_x], axis=1)
    s_e = jnp.tanh(cat_e @ params["att_w"] + params["att_b"]) @ params["att_v"] + params["att_vb"]
    s_f = jnp.tanh(cat_f @ params["att_w"] + params["att_b"]) @ params["att_v"] + params["att_vb"]
    atten = jax.nn.softmax(jnp.concatenate([s_e, s_f], axis=1), axis=1)
    z = atten[:, 0:1] * z_exec + atten[:, 1:2] * z_file
    return z, atten, z_exec, z_file


if __name__ == "__main__":
    # Small shapes: 8 nodes per graph, feature=16, hid1=32, hid2=32, hid3=16
    gcn_feature, gcn_hid1, gcn_hid2, gcn_hid3 = 16, 32, 32, 16
    n_nodes = 8

    key = jax.random.PRNGKey(0)
    kp, k1, k2, k3, k4 = jax.random.split(key, 5)

    params = init_params(kp, gcn_feature, gcn_hid1, gcn_hid2, gcn_hid3)

    exec_x = jax.random.normal(k1, (n_nodes, gcn_feature), jnp.float32)
    file_x = jax.random.normal(k2, (n_nodes, gcn_feature), jnp.float32)

    def make_adj(k, n):
        a = (jax.random.uniform(k, (n, n)) > 0.5).astype(jnp.float32)
        a = jnp.maximum(a, a.T) + jnp.eye(n, dtype=jnp.float32)
        return a / jnp.sum(a, axis=1, keepdims=True)

    exec_adj = make_adj(k3, n_nodes)
    file_adj = make_adj(k4, n_nodes)

    # Hot-path usage: prepare once (stack/bf16-cast/pad hoisted out of the call),
    # then invoke the jitted kernel path.
    prep = prepare_params(params)
    x_all, adj_all = prepare_graph_inputs(exec_x, exec_adj, file_x, file_adj)
    out = encoder_atten_3layer_prepared(prep, x_all, adj_all)
    out = jax.block_until_ready(out)
    z, atten_weight, z_exec, z_file = out

    # sanity check vs f32 reference (kernel uses bf16 MXU inputs -> looser tolerance)
    ref = _ref_forward(params, exec_x, exec_adj, file_x, file_adj)
    for got, want in zip(out, ref):
        assert got.shape == want.shape, f"shape mismatch {got.shape} vs {want.shape}"
        assert jnp.allclose(got, want, atol=5e-2, rtol=5e-2), "mismatch vs reference"

    print("KERNEL_OK")
</pallas_src>

<mosaic_0001>
module attributes {stable_mosaic.version = 11 : i64} {
  func.func @_branch_kernel(%arg0: i32, %arg1: memref<1x8x16xbf16, #tpu.memory_space<vmem>>, %arg2: memref<1x8x8xbf16, #tpu.memory_space<vmem>>, %arg3: memref<1x16x32xbf16, #tpu.memory_space<vmem>>, %arg4: memref<1x1x32xf32, #tpu.memory_space<vmem>>, %arg5: memref<1x32x32xbf16, #tpu.memory_space<vmem>>, %arg6: memref<1x1x32xf32, #tpu.memory_space<vmem>>, %arg7: memref<1x32x128xbf16, #tpu.memory_space<vmem>>, %arg8: memref<1x1x128xf32, #tpu.memory_space<vmem>>, %arg9: memref<128x32xbf16, #tpu.memory_space<vmem>>, %arg10: memref<16x32xbf16, #tpu.memory_space<vmem>>, %arg11: memref<1x32xf32, #tpu.memory_space<vmem>>, %arg12: memref<1x32xf32, #tpu.memory_space<vmem>>, %arg13: memref<1x1xf32, #tpu.memory_space<vmem>>, %arg14: memref<1x8x128xf32, #tpu.memory_space<vmem>>) attributes {dimension_semantics = [#tpu.dimension_semantics<parallel>], iteration_bounds = array<i64: 2>, scalar_prefetch = 0 : i64, scratch_operands = 0 : i64, tpu.core_type = #tpu.core_type<tc>, window_params = [{transform_indices = @transform_0, window_bounds = array<i64: 1, 8, 16>}, {transform_indices = @transform_1, window_bounds = array<i64: 1, 8, 8>}, {transform_indices = @transform_2, window_bounds = array<i64: 1, 16, 32>}, {transform_indices = @transform_3, window_bounds = array<i64: 1, 1, 32>}, {transform_indices = @transform_4, window_bounds = array<i64: 1, 32, 32>}, {transform_indices = @transform_5, window_bounds = array<i64: 1, 1, 32>}, {transform_indices = @transform_6, window_bounds = array<i64: 1, 32, 128>}, {transform_indices = @transform_7, window_bounds = array<i64: 1, 1, 128>}, {pipeline_mode = #tpu.pipeline_mode<synchronous>, transform_indices = @transform_8, window_bounds = array<i64: 128, 32>}, {pipeline_mode = #tpu.pipeline_mode<synchronous>, transform_indices = @transform_9, window_bounds = array<i64: 16, 32>}, {pipeline_mode = #tpu.pipeline_mode<synchronous>, transform_indices = @transform_10, window_bounds = array<i64: 1, 32>}, {pipeline_mode = #tpu.pipeline_mode<synchronous>, transform_indices = @transform_11, window_bounds = array<i64: 1, 32>}, {pipeline_mode = #tpu.pipeline_mode<synchronous>, transform_indices = @transform_12, window_bounds = array<i64: 1, 1>}, {transform_indices = @transform_13, window_bounds = array<i64: 1, 8, 128>}]} {
    %c0 = arith.constant 0 : index
    %c0_0 = arith.constant 0 : index
    %c0_1 = arith.constant 0 : index
    %0 = vector.load %arg2[%c0, %c0_0, %c0_1] : memref<1x8x8xbf16, #tpu.memory_space<vmem>>, vector<1x8x8xbf16>
    %1 = vector.shape_cast %0 : vector<1x8x8xbf16> to vector<8x8xbf16>
    %c0_2 = arith.constant 0 : index
    %c0_3 = arith.constant 0 : index
    %c0_4 = arith.constant 0 : index
    %2 = vector.load %arg1[%c0_2, %c0_3, %c0_4] : memref<1x8x16xbf16, #tpu.memory_space<vmem>>, vector<1x8x16xbf16>
    %3 = vector.shape_cast %2 : vector<1x8x16xbf16> to vector<8x16xbf16>
    %cst = arith.constant dense<0.000000e+00> : vector<8x16xf32>
    %4 = tpu.matmul %1, %3, %cst {dimension_numbers = #tpu.dot_dimension_numbers<[1], [0], [0], [1], [0, 0, 1, 1], [], []>} : vector<8x8xbf16>, vector<8x16xbf16>, vector<8x16xf32> -> vector<8x16xf32>
    %5 = arith.truncf %4 : vector<8x16xf32> to vector<8x16xbf16>
    %c0_5 = arith.constant 0 : index
    %c0_6 = arith.constant 0 : index
    %c0_7 = arith.constant 0 : index
    %6 = vector.load %arg3[%c0_5, %c0_6, %c0_7] : memref<1x16x32xbf16, #tpu.memory_space<vmem>>, vector<1x16x32xbf16>
    %7 = vector.shape_cast %6 : vector<1x16x32xbf16> to vector<16x32xbf16>
    %cst_8 = arith.constant dense<0.000000e+00> : vector<8x32xf32>
    %8 = tpu.matmul %5, %7, %cst_8 {dimension_numbers = #tpu.dot_dimension_numbers<[1], [0], [0], [1], [0, 0, 1, 1], [], []>} : vector<8x16xbf16>, vector<16x32xbf16>, vector<8x32xf32> -> vector<8x32xf32>
    %c0_9 = arith.constant 0 : index
    %c0_10 = arith.constant 0 : index
    %c0_11 = arith.constant 0 : index
    %9 = vector.load %arg4[%c0_9, %c0_10, %c0_11] : memref<1x1x32xf32, #tpu.memory_space<vmem>>, vector<1x1x32xf32>
    %10 = vector.shape_cast %9 : vector<1x1x32xf32> to vector<1x32xf32>
    %11 = vector.broadcast %10 : vector<1x32xf32> to vector<8x32xf32>
    %12 = arith.addf %8, %11 : vector<8x32xf32>
    %cst_12 = arith.constant 0.000000e+00 : f32
    %13 = vector.broadcast %cst_12 : f32 to vector<8x32xf32>
    %14 = arith.maximumf %12, %13 : vector<8x32xf32>
    %15 = arith.truncf %14 : vector<8x32xf32> to vector<8x32xbf16>
    %cst_13 = arith.constant dense<0.000000e+00> : vector<8x32xf32>
    %16 = tpu.matmul %1, %15, %cst_13 {dimension_numbers = #tpu.dot_dimension_numbers<[1], [0], [0], [1], [0, 0, 1, 1], [], []>} : vector<8x8xbf16>, vector<8x32xbf16>, vector<8x32xf32> -> vector<8x32xf32>
    %17 = arith.truncf %16 : vector<8x32xf32> to vector<8x32xbf16>
    %c0_14 = arith.constant 0 : index
    %c0_15 = arith.constant 0 : index
    %c0_16 = arith.constant 0 : index
    %18 = vector.load %arg5[%c0_14, %c0_15, %c0_16] : memref<1x32x32xbf16, #tpu.memory_space<vmem>>, vector<1x32x32xbf16>
    %19 = vector.shape_cast %18 : vector<1x32x32xbf16> to vector<32x32xbf16>
    %cst_17 = arith.constant dense<0.000000e+00> : vector<8x32xf32>
    %20 = tpu.matmul %17, %19, %cst_17 {dimension_numbers = #tpu.dot_dimension_numbers<[1], [0], [0], [1], [0, 0, 1, 1], [], []>} : vector<8x32xbf16>, vector<32x32xbf16>, vector<8x32xf32> -> vector<8x32xf32>
    %c0_18 = arith.constant 0 : index
    %c0_19 = arith.constant 0 : index
    %c0_20 = arith.constant 0 : index
    %21 = vector.load %arg6[%c0_18, %c0_19, %c0_20] : memref<1x1x32xf32, #tpu.memory_space<vmem>>, vector<1x1x32xf32>
    %22 = vector.shape_cast %21 : vector<1x1x32xf32> to vector<1x32xf32>
    %23 = vector.broadcast %22 : vector<1x32xf32> to vector<8x32xf32>
    %24 = arith.addf %20, %23 : vector<8x32xf32>
    %cst_21 = arith.constant 0.000000e+00 : f32
    %25 = vector.broadcast %cst_21 : f32 to vector<8x32xf32>
    %26 = arith.maximumf %24, %25 : vector<8x32xf32>
    %27 = arith.truncf %26 : vector<8x32xf32> to vector<8x32xbf16>
    %cst_22 = arith.constant dense<0.000000e+00> : vector<8x32xf32>
    %28 = tpu.matmul %1, %27, %cst_22 {dimension_numbers = #tpu.dot_dimension_numbers<[1], [0], [0], [1], [0, 0, 1, 1], [], []>} : vector<8x8xbf16>, vector<8x32xbf16>, vector<8x32xf32> -> vector<8x32xf32>
    %29 = arith.truncf %28 : vector<8x32xf32> to vector<8x32xbf16>
    %c0_23 = arith.constant 0 : index
    %c0_24 = arith.constant 0 : index
    %c0_25 = arith.constant 0 : index
    %30 = vector.load %arg7[%c0_23, %c0_24, %c0_25] : memref<1x32x128xbf16, #tpu.memory_space<vmem>>, vector<1x32x128xbf16>
    %31 = vector.shape_cast %30 : vector<1x32x128xbf16> to vector<32x128xbf16>
    %cst_26 = arith.constant dense<0.000000e+00> : vector<8x128xf32>
    %32 = tpu.matmul %29, %31, %cst_26 {dimension_numbers = #tpu.dot_dimension_numbers<[1], [0], [0], [1], [0, 0, 1, 1], [], []>} : vector<8x32xbf16>, vector<32x128xbf16>, vector<8x128xf32> -> vector<8x128xf32>
    %c0_27 = arith.constant 0 : index
    %c0_28 = arith.constant 0 : index
    %c0_29 = arith.constant 0 : index
    %33 = vector.load %arg8[%c0_27, %c0_28, %c0_29] : memref<1x1x128xf32, #tpu.memory_space<vmem>>, vector<1x1x128xf32>
    %34 = vector.shape_cast %33 : vector<1x1x128xf32> to vector<1x128xf32>
    %35 = vector.broadcast %34 : vector<1x128xf32> to vector<8x128xf32>
    %36 = arith.addf %32, %35 : vector<8x128xf32>
    %37 = arith.truncf %36 : vector<8x128xf32> to vector<8x128xbf16>
    %c0_30 = arith.constant 0 : index
    %c0_31 = arith.constant 0 : index
    %38 = vector.load %arg9[%c0_30, %c0_31] : memref<128x32xbf16, #tpu.memory_space<vmem>>, vector<128x32xbf16>
    %cst_32 = arith.constant dense<0.000000e+00> : vector<8x32xf32>
    %39 = tpu.matmul %37, %38, %cst_32 {dimension_numbers = #tpu.dot_dimension_numbers<[1], [0], [0], [1], [0, 0, 1, 1], [], []>} : vector<8x128xbf16>, vector<128x32xbf16>, vector<8x32xf32> -> vector<8x32xf32>
    %c0_33 = arith.constant 0 : index
    %c0_34 = arith.constant 0 : index
    %40 = vector.load %arg10[%c0_33, %c0_34] : memref<16x32xbf16, #tpu.memory_space<vmem>>, vector<16x32xbf16>
    %cst_35 = arith.constant dense<0.000000e+00> : vector<8x32xf32>
    %41 = tpu.matmul %3, %40, %cst_35 {dimension_numbers = #tpu.dot_dimension_numbers<[1], [0], [0], [1], [0, 0, 1, 1], [], []>} : vector<8x16xbf16>, vector<16x32xbf16>, vector<8x32xf32> -> vector<8x32xf32>
    %42 = arith.addf %39, %41 : vector<8x32xf32>
    %c0_36 = arith.constant 0 : index
    %c0_37 = arith.constant 0 : index
    %43 = vector.load %arg11[%c0_36, %c0_37] : memref<1x32xf32, #tpu.memory_space<vmem>>, vector<1x32xf32>
    %44 = vector.broadcast %43 : vector<1x32xf32> to vector<8x32xf32>
    %45 = arith.addf %42, %44 : vector<8x32xf32>
    %46 = math.tanh %45 : vector<8x32xf32>
    %c0_38 = arith.constant 0 : index
    %c0_39 = arith.constant 0 : index
    %47 = vector.load %arg12[%c0_38, %c0_39] : memref<1x32xf32, #tpu.memory_space<vmem>>, vector<1x32xf32>
    %48 = vector.broadcast %47 : vector<1x32xf32> to vector<8x32xf32>
    %49 = arith.mulf %46, %48 : vector<8x32xf32>
    %cst_40 = arith.constant dense<0.000000e+00> : vector<8xf32>
    %50 = vector.multi_reduction <add>, %49, %cst_40 [1] : vector<8x32xf32> to vector<8xf32>
    %51 = vector.shape_cast %50 : vector<8xf32> to vector<8x1xf32>
    %c0_41 = arith.constant 0 : index
    %c0_42 = arith.constant 0 : index
    %52 = vector.load %arg13[%c0_41, %c0_42] : memref<1x1xf32, #tpu.memory_space<vmem>>, vector<1x1xf32>
    %53 = vector.broadcast %52 : vector<1x1xf32> to vector<8x1xf32>
    %54 = arith.addf %51, %53 : vector<8x1xf32>
    %55 = tpu.iota {dimensions = array<i32: 1>} : vector<8x128xi32>
    %c16_i32 = arith.constant 16 : i32
    %56 = vector.broadcast %c16_i32 : i32 to vector<8x128xi32>
    %57 = arith.cmpi eq, %55, %56 : vector<8x128xi32>
    %58 = vector.shape_cast %54 : vector<8x1xf32> to vector<8x1xf32>
    %59 = vector.broadcast %58 : vector<8x1xf32> to vector<8x128xf32>
    %60 = arith.select %57, %59, %36 : vector<8x128xi1>, vector<8x128xf32>
    %c0_43 = arith.constant 0 : index
    %c0_44 = arith.constant 0 : index
    %c0_45 = arith.constant 0 : index
    %61 = vector.load %arg14[%c0_43, %c0_44, %c0_45] : memref<1x8x128xf32, #tpu.memory_space<vmem>>, vector<1x8x128xf32>
    %62 = vector.shape_cast %61 : vector<1x8x128xf32> to vector<8x128xf32>
    %63 = vector.shape_cast %60 : vector<8x128xf32> to vector<1x8x128xf32>
    tpu.vector_store %arg14[%c0_43, %c0_44, %c0_45], %63 {strides = array<i32>} : memref<1x8x128xf32, #tpu.memory_space<vmem>>, vector<1x8x128xf32>,
    return
  }
  func.func @transform_0(%arg0: i32) -> (i32, i32, i32) {
    %c0_i32 = arith.constant 0 : i32
    %c0_i32_0 = arith.constant 0 : i32
    %c0_i32_1 = arith.constant 0 : i32
    return %arg0, %c0_i32, %c0_i32_0 : i32, i32, i32
  }
  func.func @transform_1(%arg0: i32) -> (i32, i32, i32) {
    %c0_i32 = arith.constant 0 : i32
    %c0_i32_0 = arith.constant 0 : i32
    %c0_i32_1 = arith.constant 0 : i32
    return %arg0, %c0_i32, %c0_i32_0 : i32, i32, i32
  }
  func.func @transform_2(%arg0: i32) -> (i32, i32, i32) {
    %c0_i32 = arith.constant 0 : i32
    %c0_i32_0 = arith.constant 0 : i32
    %c0_i32_1 = arith.constant 0 : i32
    return %arg0, %c0_i32, %c0_i32_0 : i32, i32, i32
  }
  func.func @transform_3(%arg0: i32) -> (i32, i32, i32) {
    %c0_i32 = arith.constant 0 : i32
    %c0_i32_0 = arith.constant 0 : i32
    %c0_i32_1 = arith.constant 0 : i32
    return %arg0, %c0_i32, %c0_i32_0 : i32, i32, i32
  }
  func.func @transform_4(%arg0: i32) -> (i32, i32, i32) {
    %c0_i32 = arith.constant 0 : i32
    %c0_i32_0 = arith.constant 0 : i32
    %c0_i32_1 = arith.constant 0 : i32
    return %arg0, %c0_i32, %c0_i32_0 : i32, i32, i32
  }
  func.func @transform_5(%arg0: i32) -> (i32, i32, i32) {
    %c0_i32 = arith.constant 0 : i32
    %c0_i32_0 = arith.constant 0 : i32
    %c0_i32_1 = arith.constant 0 : i32
    return %arg0, %c0_i32, %c0_i32_0 : i32, i32, i32
  }
  func.func @transform_6(%arg0: i32) -> (i32, i32, i32) {
    %c0_i32 = arith.constant 0 : i32
    %c0_i32_0 = arith.constant 0 : i32
    %c0_i32_1 = arith.constant 0 : i32
    return %arg0, %c0_i32, %c0_i32_0 : i32, i32, i32
  }
  func.func @transform_7(%arg0: i32) -> (i32, i32, i32) {
    %c0_i32 = arith.constant 0 : i32
    %c0_i32_0 = arith.constant 0 : i32
    %c0_i32_1 = arith.constant 0 : i32
    return %arg0, %c0_i32, %c0_i32_0 : i32, i32, i32
  }
  func.func @transform_8(%arg0: i32) -> (i32, i32) {
    %c0_i32 = arith.constant 0 : i32
    %c0_i32_0 = arith.constant 0 : i32
    %c0_i32_1 = arith.constant 0 : i32
    return %c0_i32, %c0_i32_0 : i32, i32
  }
  func.func @transform_9(%arg0: i32) -> (i32, i32) {
    %c0_i32 = arith.constant 0 : i32
    %c0_i32_0 = arith.constant 0 : i32
    %c0_i32_1 = arith.constant 0 : i32
    return %c0_i32, %c0_i32_0 : i32, i32
  }
  func.func @transform_10(%arg0: i32) -> (i32, i32) {
    %c0_i32 = arith.constant 0 : i32
    %c0_i32_0 = arith.constant 0 : i32
    %c0_i32_1 = arith.constant 0 : i32
    return %c0_i32, %c0_i32_0 : i32, i32
  }
  func.func @transform_11(%arg0: i32) -> (i32, i32) {
    %c0_i32 = arith.constant 0 : i32
    %c0_i32_0 = arith.constant 0 : i32
    %c0_i32_1 = arith.constant 0 : i32
    return %c0_i32, %c0_i32_0 : i32, i32
  }
  func.func @transform_12(%arg0: i32) -> (i32, i32) {
    %c0_i32 = arith.constant 0 : i32
    %c0_i32_0 = arith.constant 0 : i32
    %c0_i32_1 = arith.constant 0 : i32
    return %c0_i32, %c0_i32_0 : i32, i32
  }
  func.func @transform_13(%arg0: i32) -> (i32, i32, i32) {
    %c0_i32 = arith.constant 0 : i32
    %c0_i32_0 = arith.constant 0 : i32
    %c0_i32_1 = arith.constant 0 : i32
    return %arg0, %c0_i32, %c0_i32_0 : i32, i32, i32
  }
}

</mosaic_0001>

<bundles_post_ra>
// kernel: encoder_atten_3layer_prepared.1
= control target key start
LH: loop header
LB: loop body
LE: loop exit
PB: predicated region body
PF: predicated region fallthrough
CT: control target
= control target key end

     0   :  { %s2336_s0 = inlined_call_operand.hbm [shape: bf16[2,8,16], index: 0, kind: input, shape index: {}]   ;;  %s2337_s1 = inlined_call_operand.hbm [shape: bf16[2,8,8], index: 1, kind: input, shape index: {}]   ;;  %s2338_s2 = inlined_call_operand.vmem [shape: bf16[2,16,32], index: 2, kind: input, shape index: {}]   ;;  %s2339_s3 = inlined_call_operand.vmem [shape: f32[2,1,32], index: 3, kind: input, shape index: {}]   ;;  %s2340_s4 = inlined_call_operand.vmem [shape: bf16[2,32,32], index: 4, kind: input, shape index: {}]   ;;  %s2341_s5 = inlined_call_operand.hbm [shape: f32[2,1,32], index: 5, kind: input, shape index: {}]   ;;  %s2342_s6 = inlined_call_operand.vmem [shape: bf16[2,32,128], index: 6, kind: input, shape index: {}]   ;;  %s2343_s7 = inlined_call_operand.hbm [shape: f32[2,1,128], index: 7, kind: input, shape index: {}]   ;;  %s2344_s8 = inlined_call_operand.vmem [shape: bf16[128,32], index: 8, kind: input, shape index: {}]   ;;  %s2345_s9 = inlined_call_operand.hbm [shape: bf16[16,32], index: 9, kind: input, shape index: {}]   ;;  %s2346_s10 = inlined_call_operand.hbm [shape: f32[1,32], index: 10, kind: input, shape index: {}]   ;;  %s2347_s11 = inlined_call_operand.hbm [shape: f32[1,32], index: 11, kind: input, shape index: {}]   ;;  %s2348_s12 = inlined_call_operand.<no memory space> [shape: f32[1,1], index: 12, kind: input, shape index: {}]   ;;  %s2349_s13 = inlined_call_operand.vmem [shape: f32[2,8,128], index: 13, kind: output, shape index: {}]  }
   0x1   :  { %2363 = sst [smem:[#allocation22_spill]] %s2336_s0  ;;  %v18_v0 = vstv %s2348_s12 }
   0x2   :  { %2364 = sst [smem:[#allocation23_spill]] %s2337_s1  ;;  %19 = vst [vmem:[#allocation2] sm:$0x1] %v18_v0 }
   0x3   :  { %2365 = sst [smem:[#allocation24_spill]] %s2344_s8 }
   0x4   :  { %2366 = sst [smem:[#allocation25_spill]] %s2345_s9 }
   0x5   :  { %2367 = sst [smem:[#allocation26_spill]] %s2346_s10 }
   0x6   :  { %2368 = sst [smem:[#allocation27_spill]] %s2349_s13 }
   0x7   :  { %20 = vsyncpa [#allocation4], 0 }
   0x8   :  { %22 = vsyncpa [#allocation4 + $0x1], 0 }
   0x9   :  { %23 = vsyncpa [#allocation6], 0 }
   0xa   :  { %25 = vsyncpa [#allocation6 + $0x1], 0 }
   0xb   :  { %26 = vsyncpa [#allocation9], 0 }
   0xc   :  { %28 = vsyncpa [#allocation9 + $0x1], 0 }
   0xd   :  { %29 = vsyncpa [#allocation12], 0  ;;  %s1982_s27 = smov 0   ;;  %s1984_s28 = smov 0  }
   0xe   :  { %s1986_s29 = smov 0   ;;  %s1988_s30 = smov 0  }
   0xf LB: > { %2369 = sst [smem:[#allocation19_spill]] %s1891_s29  ;;  %s2001_s12 = sadd.s32 4294967295, %s1895_s30   ;;  %s1895_s30 = sphi %s1988_s30, %s2396_s30   ;;  %s1891_s29 = sphi %s1986_s29, %s2398_s29   ;;  %s1887_s28 = sphi %s1984_s28, %s2400_s28   ;;  %s1883_s27 = sphi %s1982_s27, %s2399_s27  }
  0x10   : > { %p55_p0 = scmp.ne.s32.totalorder %s1887_s28, %s1883_s27  ;;  %p2354_p1 = scmp.eq.s32.totalorder %s2001_s12, 0 }
  0x11   : > { %p1401_p2 = scmp.ge.s32.totalorder %s1895_s30, 1  ;;  %p379_p3 = scmp.lt.s32.totalorder %s1895_s30, 3 }
  0x12   : > { %p2009_p4 = por %p2354_p1, %p55_p0  ;;  %s1897_s16 = smov [#allocation10]  }
  0x13   : > { %p2013_p5 = pnand %p1401_p2, %p379_p3  ;;  %s394_s17 = sshll.u32 %s1897_s16, 4  ;;  %s395_s17 = int_to_ptr.vmem [resolvable:$true] %s394_s17 }
  0x14   : > { %s2370_s14 = scalar_select %p2009_p4, 1, 0 }
  0x15   : > { %s2371_s15 = scalar_select %p2013_p5, 1, 0 }
  0x16   : > { %p1568_p6 = pneg %p2013_p5  ;;  %s1898_s19 = smov [#allocation11]  }
  0x17   : > { %s408_s20 = sshll.u32 %s1898_s19, 4  ;;  %s1666_s21 = scalar_lea.vmem %s395_s17, 128  ;;  %s409_s20 = int_to_ptr.vmem [resolvable:$true] %s408_s20 }
  0x18   : > { %p2021_p7 = pnand %p1568_p6, %p2354_p1  ;;  %p1667_p9 = scmp.ne.s32.totalorder %s395_s17, %s1666_s21 }
  0x19   : > { %p1674_p12 = scmp.lt.s32.totalorder %s395_s17, %s395_s17  ;;  %p1675_p13 = scmp.lt.s32.totalorder %s1666_s21, %s1666_s21 }
  0x1a   : > { %s2372_s18 = scalar_select %p2021_p7, 1, 0 }
  0x1b   : > { %p2355_p8 = pneg %p2021_p7  ;;  %p1676_p0 = por %p1675_p13, %p1674_p12 }
  0x1d   : > { %p1669_p10 = pnand %p1667_p9, %p2355_p8 }
  0x1f   : > { %p1670_p11 = pneg %p1669_p10 }
  0x21   : > { %p1677_p2 = pnand %p1676_p0, %p1670_p11 }
  0x23   : > { %1680 = shalt.err (!%p1677_p2)
}
  0x24   : > { %s1899_s22 = smov 64   ;;  %s1900_s23 = smov 4  }
  0x25   : > { %s2373_s9 = sld [smem:[#allocation25_spill]]  ;;  %s1692_s26 = scalar_lea.vmem %s409_s20, 16 }
  0x26   : > { %p1693_p3 = scmp.ne.s32.totalorder %s409_s20, %s1692_s26  ;;  %s1699_s27 = scalar_lea.vmem %s409_s20, 32 }
  0x27   : > { %p1700_p10 = scmp.lt.s32.totalorder %s409_s20, %s409_s20  ;;  %p1701_p12 = scmp.lt.s32.totalorder %s1699_s27, %s1692_s26 }
  0x28   : > { %p1695_p6 = pnand %p1693_p3, %p2355_p8 }
  0x29   : > { %p1702_p11 = por %p1701_p12, %p1700_p10 }
  0x2a   : > { %p1696_p9 = pneg %p1695_p6 }
  0x2b   : > { %1571 = dma.hbm_to_vmem [thread:$0]  (!%p2021_p7), %s2373_s9, 128, %s395_s17, [#allocation9], %s1899_s22, %s1899_s22, %s1900_s23  }
  0x2c   : > { %p1703_p13 = pnand %p1702_p11, %p1696_p9 }
  0x2e   : > { %1706 = shalt.err (!%p1703_p13)
}
  0x2f   : > { %s2374_s10 = sld [smem:[#allocation26_spill]]  ;;  %s2044_s17 = sadd.s32 1, %s1895_s30  }
  0x30   : > { %2375 = sst [smem:[#allocation20_spill]] %s2044_s17  ;;  %s42_s21 = sadd.s32 1, %s1891_s29 }
  0x31   : > { %s39_s22 = ssub.s32 %s1895_s30, %s2044_s17  ;;  %p49_p0 = scmp.ne.s32.totalorder %s1891_s29, %s1887_s28 }
  0x32   : > { %p40_p2 = scmp.eq.s32.totalorder %s39_s22, 0  ;;  %p50_p3 = scmp.eq.s32.totalorder %s1895_s30, 0 }
  0x33   : > { %p1594_p6 = scmp.lt.s32.totalorder %s1895_s30, 2  ;;  %s2054_s23 = sand.u32 1, %s1891_s29  }
  0x34   : > { %s2057_s24 = scalar_select %p40_p2, %s1891_s29, %s42_s21  }
  0x35   : > { %1574 = dma.hbm_to_vmem [thread:$0]  (!%p2021_p7), %s2374_s10, 16, %s409_s20, [#allocation12]  }
  0x36   : > { %2376 = sst [smem:[#allocation21_spill]] %s2057_s24  ;;  %p51_p9 = por %p50_p3, %p49_p0 }
  0x37   : > { %s2351_s25 = sshll.u32 %s2054_s23, 2  ;;  %s2352_s26 = sshll.u32 %s1895_s30, 6 }
  0x38   : > { %s2353_s20 = sand.u32 1, %s1895_s30   ;;  %p2062_p10 = pnand %p1594_p6, %p51_p9 }
  0x39   : > { %s2378_s1 = sld [smem:[#allocation23_spill]]  ;;  %s455_s21 = scalar_lea.vmem [#allocation5], %s2351_s25 }
  0x3a   : > { %s462_s9 = sshll.u32 %s455_s21, 4  ;;  %s2077_s10 = scalar_lea.sflag [#allocation6], %s2353_s20  ;;  %s463_s9 = int_to_ptr.vmem [resolvable:$true] %s462_s9 }
  0x3b   : > { %p2083_p11 = pneg %p2062_p10 }
  0x3f   : > { %s2071_s22 = scalar_lea.hbm %s2378_s1, %s2352_s26  ;;  %s1712_s25 = scalar_lea.hbm %s2378_s1, 128 }
  0x40   : > { %s1707_s24 = scalar_lea.hbm %s2071_s22, 64  ;;  %p1713_p2 = scmp.lt.s32.totalorder %s2071_s22, %s2378_s1 }
  0x41   : > { %p1708_p12 = scmp.ne.s32.totalorder %s2071_s22, %s1707_s24  ;;  %p1714_p3 = scmp.lt.s32.totalorder %s1712_s25, %s1707_s24 }
  0x43   : > { %p1710_p13 = pnand %p2083_p11, %p1708_p12  ;;  %p1715_p6 = por %p1714_p3, %p1713_p2 }
  0x45   : > { %p1711_p0 = pneg %p1710_p13 }
  0x47   : > { %p1716_p9 = pnand %p1715_p6, %p1711_p0 }
  0x49   : > { %1719 = shalt.err (!%p1716_p9)
}
  0x4a   : > { %s1720_s20 = scalar_lea.vmem %s463_s9, 64  ;;  %s1901_s17 = smov [#allocation5]  }
  0x4b   : > { %p1721_p1 = scmp.ne.s32.totalorder %s463_s9, %s1720_s20  ;;  %s1725_s13 = sshll.u32 %s1901_s17, 4  ;;  %s1726_s13 = int_to_ptr.vmem [resolvable:$false] %s1725_s13 }
  0x4c   : > { %s1727_s8 = scalar_lea.vmem %s1726_s13, 128  ;;  %p1728_p12 = scmp.lt.s32.totalorder %s463_s9, %s1726_s13 }
  0x4d   : > { %p1723_p8 = pnand %p1721_p1, %p2083_p11  ;;  %p1729_p13 = scmp.lt.s32.totalorder %s1727_s8, %s1720_s20 }
  0x4f   : > { %p1724_p4 = pneg %p1723_p8  ;;  %p1730_p5 = por %p1729_p13, %p1728_p12 }
  0x51   : > { %p1731_p7 = pnand %p1730_p5, %p1724_p4 }
  0x53   : > { %1734 = shalt.err (!%p1731_p7)
}
  0x54   : > { %1584 = dma.hbm_to_vmem [thread:$0]  (!%p2062_p10), %s2071_s22, 64, %s463_s9, %s2077_s10  }
  0x55   : > { %s1902_s24 = smov [#allocation13]   ;;  %s2380_s26 = sshll.u32 %s1895_s30, 6 }
  0x56   : > { %s419_s25 = sshll.u32 %s1902_s24, 4  ;;  %s2381_s0 = sld [smem:[#allocation22_spill]]  ;;  %s420_s25 = int_to_ptr.vmem [resolvable:$true] %s419_s25 }
  0x57   : > { %s1746_s8 = scalar_lea.vmem %s420_s25, 16  ;;  %p2382_p4 = scmp.ne.s32.totalorder %s2372_s18, 0 }
  0x58   : > { %p1747_p1 = scmp.ne.s32.totalorder %s420_s25, %s1746_s8  ;;  %s1753_s13 = scalar_lea.vmem %s420_s25, 32 }
  0x59   : > { %p2383_p5 = pneg %p2382_p4  ;;  %p1754_p0 = scmp.lt.s32.totalorder %s420_s25, %s420_s25 }
  0x5a   : > { %p1755_p2 = scmp.lt.s32.totalorder %s1753_s13, %s1746_s8 }
  0x5b   : > { %p1749_p7 = pnand %p1747_p1, %p2383_p5 }
  0x5c   : > { %s2107_s19 = scalar_lea.hbm %s2381_s0, %s2380_s26  ;;  %p1756_p3 = por %p1755_p2, %p1754_p0 }
  0x5d   : > { %p1750_p8 = pneg %p1749_p7 }
  0x5f   : > { %p1757_p6 = pnand %p1756_p3, %p1750_p8 }
  0x61   : > { %1760 = shalt.err (!%p1757_p6)
}
  0x62   : > { %1577 = dma.hbm_to_vmem [thread:$0]  (!%p2382_p4), %s2347_s11, 16, %s420_s25, [#allocation12]  }
  0x63   : > { %s2384_s22 = sshll.u32 %s2054_s23, 2  ;;  %s434_s16 = scalar_lea.sflag [#allocation4], %s2054_s23 }
  0x64   : > { %s437_s21 = scalar_lea.vmem [#allocation3], %s2384_s22  ;;  %s1761_s17 = scalar_lea.hbm %s2107_s19, 64 }
  0x65   : > { %s444_s24 = sshll.u32 %s437_s21, 4  ;;  %p1762_p9 = scmp.ne.s32.totalorder %s2107_s19, %s1761_s17  ;;  %s445_s24 = int_to_ptr.vmem [resolvable:$true] %s444_s24 }
  0x66   : > { %s1766_s13 = scalar_lea.hbm %s2381_s0, 128  ;;  %p1767_p1 = scmp.lt.s32.totalorder %s2107_s19, %s2381_s0 }
  0x67   : > { %p1764_p12 = pnand %p1762_p9, %p2083_p11  ;;  %p1768_p4 = scmp.lt.s32.totalorder %s1766_s13, %s1761_s17 }
  0x69   : > { %p1765_p13 = pneg %p1764_p12  ;;  %p1769_p5 = por %p1768_p4, %p1767_p1 }
  0x6b   : > { %p1770_p7 = pnand %p1769_p5, %p1765_p13 }
  0x6d   : > { %1773 = shalt.err (!%p1770_p7)
}
  0x6e   : > { %s1774_s25 = scalar_lea.vmem %s445_s24, 64  ;;  %s1903_s22 = smov [#allocation3]  }
  0x6f   : > { %p1775_p8 = scmp.ne.s32.totalorder %s445_s24, %s1774_s25  ;;  %s1779_s21 = sshll.u32 %s1903_s22, 4  ;;  %s1780_s21 = int_to_ptr.vmem [resolvable:$false] %s1779_s21 }
  0x70   : > { %s1781_s26 = scalar_lea.vmem %s1780_s21, 128  ;;  %p1782_p3 = scmp.lt.s32.totalorder %s445_s24, %s1780_s21 }
  0x71   : > { %p1777_p0 = pnand %p1775_p8, %p2083_p11  ;;  %p1783_p6 = scmp.lt.s32.totalorder %s1781_s26, %s1774_s25 }
  0x73   : > { %p1778_p2 = pneg %p1777_p0  ;;  %p1784_p9 = por %p1783_p6, %p1782_p3 }
  0x75   : > { %p1785_p12 = pnand %p1784_p9, %p1778_p2 }
  0x77   : > { %1788 = shalt.err (!%p1785_p12)
}
  0x78   : > { %1581 = dma.hbm_to_vmem [thread:$0]  (!%p2062_p10), %s2107_s19, 64, %s445_s24, %s434_s16  }
  0x79   : > { %s2385_s17 = sshll.u32 %s1895_s30, 4  ;;  %s494_s9 = scalar_lea.vmem [#allocation7], %s2054_s23 }
  0x7a   : > { %s499_s13 = scalar_lea.hbm %s2341_s5, %s2385_s17  ;;  %s501_s20 = sshll.u32 %s494_s9, 4  ;;  %s502_s20 = int_to_ptr.vmem [resolvable:$true] %s501_s20 }
  0x7b   : > { %s1789_s22 = scalar_lea.hbm %s499_s13, 16  ;;  %s1794_s21 = scalar_lea.hbm %s2341_s5, 32 }
  0x7c   : > { %p1790_p13 = scmp.ne.s32.totalorder %s499_s13, %s1789_s22  ;;  %p1795_p5 = scmp.lt.s32.totalorder %s499_s13, %s2341_s5 }
  0x7d   : > { %p1796_p7 = scmp.lt.s32.totalorder %s1794_s21, %s1789_s22 }
  0x7e   : > { %p1792_p1 = pnand %p1790_p13, %p2083_p11 }
  0x7f   : > { %p1797_p8 = por %p1796_p7, %p1795_p5 }
  0x80   : > { %p1793_p4 = pneg %p1792_p1 }
  0x82   : > { %p1798_p0 = pnand %p1797_p8, %p1793_p4 }
  0x84   : > { %1801 = shalt.err (!%p1798_p0)
}
  0x85   : > { %s1802_s19 = scalar_lea.vmem %s502_s20, 16  ;;  %s1904_s24 = smov [#allocation7]  }
  0x86   : > { %p1803_p2 = scmp.ne.s32.totalorder %s502_s20, %s1802_s19  ;;  %s1807_s16 = sshll.u32 %s1904_s24, 4  ;;  %s1808_s16 = int_to_ptr.vmem [resolvable:$false] %s1807_s16 }
  0x87   : > { %s1809_s17 = scalar_lea.vmem %s1808_s16, 32  ;;  %p1810_p9 = scmp.lt.s32.totalorder %s502_s20, %s1808_s16 }
  0x88   : > { %p1805_p3 = pnand %p1803_p2, %p2083_p11  ;;  %p1811_p12 = scmp.lt.s32.totalorder %s1809_s17, %s1802_s19 }
  0x8a   : > { %p1806_p6 = pneg %p1805_p3  ;;  %p1812_p13 = por %p1811_p12, %p1810_p9 }
  0x8c   : > { %p1813_p1 = pnand %p1812_p13, %p1806_p6 }
  0x8e   : > { %1816 = shalt.err (!%p1813_p1)
}
  0x8f   : > { %1587 = dma.hbm_to_vmem [thread:$0]  (!%p2062_p10), %s499_s13, 16, %s502_s20, %s2077_s10  }
  0x90   : > { %s2386_s0 = sshll.u32 %s1895_s30, 4  ;;  %s519_s9 = scalar_lea.vmem [#allocation8], %s2054_s23 }
  0x91   : > { %s2161_s8 = scalar_lea.hbm %s2343_s7, %s2386_s0  ;;  %s526_s22 = sshll.u32 %s519_s9, 4  ;;  %s527_s22 = int_to_ptr.vmem [resolvable:$true] %s526_s22 }
  0x92   : > { %s2387_s26 = sand.u32 1, %s1895_s30   ;;  %s1817_s21 = scalar_lea.hbm %s2161_s8, 16 }
  0x93   : > { %s517_s25 = scalar_lea.sflag [#allocation9], %s2387_s26  ;;  %p1818_p4 = scmp.ne.s32.totalorder %s2161_s8, %s1817_s21 }
  0x94   : > { %s1822_s20 = scalar_lea.hbm %s2343_s7, 32  ;;  %p1823_p8 = scmp.lt.s32.totalorder %s2161_s8, %s2343_s7 }
  0x95   : > { %p1820_p5 = pnand %p1818_p4, %p2083_p11  ;;  %p1824_p0 = scmp.lt.s32.totalorder %s1822_s20, %s1817_s21 }
  0x97   : > { %p1821_p7 = pneg %p1820_p5  ;;  %p1825_p2 = por %p1824_p0, %p1823_p8 }
  0x99   : > { %p1826_p3 = pnand %p1825_p2, %p1821_p7 }
  0x9b   : > { %1829 = shalt.err (!%p1826_p3)
}
  0x9c   : > { %s1830_s23 = scalar_lea.vmem %s527_s22, 16  ;;  %s1905_s30 = smov [#allocation8]  }
  0x9d   : > { %p1831_p6 = scmp.ne.s32.totalorder %s527_s22, %s1830_s23  ;;  %s1835_s16 = sshll.u32 %s1905_s30, 4  ;;  %s1836_s16 = int_to_ptr.vmem [resolvable:$false] %s1835_s16 }
  0x9e   : > { %s1837_s17 = scalar_lea.vmem %s1836_s16, 32  ;;  %p1838_p13 = scmp.lt.s32.totalorder %s527_s22, %s1836_s16 }
  0x9f   : > { %p1833_p9 = pnand %p1831_p6, %p2083_p11  ;;  %p1839_p1 = scmp.lt.s32.totalorder %s1837_s17, %s1830_s23 }
  0xa1   : > { %p1834_p12 = pneg %p1833_p9  ;;  %p1840_p4 = por %p1839_p1, %p1838_p13 }
  0xa3   : > { %p1841_p5 = pnand %p1840_p4, %p1834_p12 }
  0xa5   : > { %1844 = shalt.err (!%p1841_p5)
}
  0xa6   : > { %1590 = dma.hbm_to_vmem [thread:$0]  (!%p2062_p10), %s2161_s8, 16, %s527_s22, %s517_s25  }
  0xa7   : > { %p2388_p7 = scmp.ne.s32.totalorder %s2371_s15, 0 }
  0xa8   : > { %s2185_s29 = sand.u32 (!%p2388_p7), 1, %s1887_s28   ;;  %p2389_p11 = scmp.ne.s32.totalorder (!%p2388_p7), %s2370_s14, 0 }
  0xa9   : > { %535 = sbr.rel (%p2388_p7) target bundleno = 1862 (0x746), region = 72  ;;  %s1413_s0 = sshll.u32 (!%p2388_p7), %s2185_s29, 2 }
  0xaa   : > { %s538_s1 = scalar_lea.sflag (!%p2388_p7), [#allocation4], %s2185_s29  ;;  %s541_s18 = scalar_lea.vmem (!%p2388_p7), [#allocation3], %s1413_s0 }
  0xae   : > { %1862 = dma.done.wait (%p2389_p11), %s538_s1, 64  }
  0xaf   : > { %1864 = vsyncadd (%p2389_p11), %s538_s1, 4294967232  ;;  %s546_s27 = sand.u32 1, %s2001_s12   ;;  %s550_s15 = scalar_lea.vmem [#allocation5], %s1413_s0 }
  0xb0   : > { %s547_s8 = scalar_lea.sflag [#allocation6], %s546_s27 }
  0xb1   : > { %1866 = dma.done.wait (%p2389_p11), %s547_s8, 80  }
  0xb2   : > { %1868 = vsyncadd (%p2389_p11), %s547_s8, 4294967216  ;;  %s558_s9 = scalar_lea.vmem [#allocation7], %s2185_s29  ;;  %s564_s22 = scalar_lea.sflag [#allocation9], %s546_s27 }
  0xb3   : > { %s566_s26 = scalar_lea.vmem [#allocation8], %s2185_s29 }
  0xb4   : > { %1870 = dma.done.wait (%p2389_p11), %s564_s22, 16  }
  0xb5   : > { %1872 = vsyncadd (%p2389_p11), %s564_s22, 4294967280  ;;  %p2390_p10 = scmp.eq.s32.totalorder %s2001_s12, 0 }
  0xb7   : > { %1874 = dma.done.wait (%p2390_p10), [#allocation9], 128   ;;  %p2391_p8 = pmov %p2390_p10 }
  0xb9   : > { %1876 = vsyncadd (%p2391_p8), [#allocation9], 4294967168  ;;  %p2392_p0 = pmov %p2391_p8 }
  0xbb   : > { %1878 = dma.done.wait (%p2392_p0), [#allocation12], 32   ;;  %p2393_p2 = pmov %p2392_p0 }
  0xbc   : > { %v1906_v1 = vmov 0.0   ;;  %vm1907_vm0 = vmmov 0   ;;  %vm680_vm1 = vcmask 1043456   ;;  %v2218_v2 = vld [vmem:[%s541_s18] sm:$0xf]  ;;  %vm676_vm2 = vcmask 64512  }
  0xbd   : > { %1880 = vsyncadd (%p2393_p2), [#allocation12], 4294967264  ;;  %1482 = vmatprep.subr.bf16.mxu0 %v1906_v1  ;;  %1484 = vmatprep.mubr.msk.bf16.mxu0 %vm1907_vm0, %v1906_v1  ;;  %v2220_v3 = vld [vmem:[%s550_s15] sm:$0xf]  ;;  %v682_v4 = vsel %vm680_vm1, %v2218_v2, 0  ;;  %p651_p3 = scmp.lt.s32.totalorder %s2001_s12, 1 }
  0xbe   : > { %1488 = vmatprep.subr.bf16.mxu1 %v1906_v1  ;;  %1490 = vmatprep.mubr.msk.bf16.mxu1 %vm1907_vm0, %v1906_v1  ;;  %vm740_vm3 = vcmask 130048   ;;  %vm853_vm4 = vcmask 261120   ;;  %v1430_v28 = vld [vmem:[%s558_s9] ss:$0 sm:$0xff]  ;;  %s2394_s8 = sld [smem:[#allocation24_spill]]  ;;  %v1651_v50 = vld [vmem:[#allocation10] sm:$0xff]  }
  0xbf   : > { %1483 = vmatpush3.bf16.msra.mxu0 %v682_v4  ;;  %s2402_s12 = smov (!%p651_p3, %s2001_s12), 1  ;;  %v1435_v52 = vld [vmem:[%s566_s26] ss:$0 sm:$0xff]  ;;  %v1449_v0 = vld [vmem:[#allocation11] ss:$0 sm:$0xff]  ;;  %s2395_s0 = sld [smem:[#allocation27_spill]] }
  0xc0   : > { %1494 = vmatprep.subr.bf16.mxu0 %v1906_v1  ;;  %s1454_s14 = sshll.u32 %s2402_s12, 3  ;;  %s1455_s13 = sshll.u32 %s2402_s12, 4 }
  0xc1   : > { %s655_s10 = scalar_lea.vmem %s2338_s2, %s1454_s14  ;;  %s663_s24 = scalar_lea.vmem %s2340_s4, %s1455_s13 }
  0xc2   : > { %1485 = vmatmul.mubr.msk.bf16.vlgmr.msra.gmra.mxu0 %vm676_vm2, %v2220_v3  ;;  %v1639_v5 = vld [vmem:[%s655_s10] sm:$0xff]   ;;  %s658_s16 = scalar_lea.vmem %s2339_s3, %s2402_s12  ;;  %v1640_v20 = vld [vmem:[%s663_s24 + $0x8] sm:$0xff]   ;;  %s668_s1 = scalar_lea.vmem %s2342_s6, %s1455_s13 }
  0xc3   : > { %1496 = vmatprep.mubr.msk.bf16.mxu0 %vm1907_vm0, %v1906_v1  ;;  %1489 = vmatpush3.bf16.msra.mxu1 %v1639_v5  ;;  %v1426_v11 = vld [vmem:[%s658_s16] ss:$0 sm:$0xff]  ;;  %v1642_v27 = vld [vmem:[%s668_s1 + $0x8] sm:$0xff]  }
  0xc4   : > { %1514 = vmatprep.subr.bf16.mxu1 %v1906_v1  ;;  %v1641_v21 = vld [vmem:[%s663_s24] sm:$0xff]   ;;  %v1644_v39 = vld [vmem:[%s2394_s8 + $0x38] sm:$0xff]   ;;  %v1645_v43 = vld [vmem:[%s2394_s8 + $0x30] sm:$0xff]  }
  0xc5   : > { %v1643_v37 = vld [vmem:[%s668_s1] sm:$0xff]   ;;  %v1646_v45 = vld [vmem:[%s2394_s8 + $0x28] sm:$0xff]   ;;  %v1648_v47 = vld [vmem:[%s2394_s8 + $0x18] sm:$0xff]   ;;  %s672_s1 = scalar_lea.vmem %s2395_s0, %s1454_s14 }
  0xc6   : > { %v1647_v46 = vld [vmem:[%s2394_s8 + $0x20] sm:$0xff]   ;;  %v1649_v48 = vld [vmem:[%s2394_s8 + $0x10] sm:$0xff]   ;;  %v1650_v49 = vld [vmem:[%s2394_s8 + $0x8] sm:$0xff]  }
  0xc7   : > { %v1652_v51 = vld [vmem:[%s2394_s8] sm:$0xff]  }
 0x182   : > { %v718_v6 = vpop.f32.mrf.mxu0 }
 0x183   : > { %v724_v7 = vpack.c.bf16 %v718_v6, %v718_v6  ;;  %v1450_v6 = vld [vmem:[#allocation13] ss:$0 sm:$0xff] }
 0x184   : > { %v1486_v8 = vpop.f32.mrf.mxu0 }
 0x185   : > { %1491 = vmatmul.mubr.msk.bf16.vlgmr.msra.gmra.mxu1 %vm740_vm3, %v724_v7 }
 0x186   : > { %v721_v9 = vpop.f32.mrf.mxu0  ;;  %1518 = vmatprep.mubr.msk.bf16.mxu1 %vm1907_vm0, %v1906_v1  ;;  %1515 = vmatpush3.bf16.msra.mxu1 %v1642_v27 }
 0x187   : > { %1516 = vmatprep.subr.bf16.mxu1 %v1906_v1 }
 0x188   : > { %v1487_v10 = vpop.f32.mrf.mxu0 }
 0x189   : > { %v1908_v10 = vmov 0  }
 0x18a   : > { %1517 = vmatpush3.bf16.msra.mxu1 %v1643_v37  ;;  %1638 = vset.pattern.permute.xlu0 %v1908_v10 }
 0x18b   : > { %1528 = vmatprep.subr.bf16.mxu1 %v1906_v1 }
 0x245   : > { %v778_v12 = vpop.f32.mrf.mxu1 }
 0x246   : > { %v779_v13 = vadd.f32 %v1426_v11, %v778_v12  ;;  %v1451_v11 = vld [vmem:[#allocation2] ss:$0 sm:$0xff] }
 0x247   : > { %v1492_v14 = vpop.f32.mrf.mxu1 }
 0x248   : > { %v784_v15 = vmax.f32 %v779_v13, 0.0  ;;  %v1192_v14 = vlaneseq }
 0x249   : > { %v781_v16 = vpop.f32.mrf.mxu1 }
 0x24a   : > { %v785_v17 = vpack.c.bf16 %v784_v15, %v784_v15  ;;  %v1193_v15 = vand.u32 127, %v1192_v14 }
 0x24b   : > { %v1493_v18 = vpop.f32.mrf.mxu1 }
 0x24c   : > { %v787_v19 = vsel %vm680_vm1, %v785_v17, 0  ;;  %vm1194_vm5 = vcmp.eq.s32.totalorder %v1193_v15, 16 }
 0x24d   : > { %1495 = vmatpush3.bf16.msra.mxu0 %v787_v19 }
 0x24e   : > { %1500 = vmatprep.subr.bf16.mxu0 %v1906_v1 }
 0x250   : > { %1497 = vmatmul.mubr.msk.bf16.vlgmr.msra.gmra.mxu0 %vm676_vm2, %v2220_v3 }
 0x251   : > { %1501 = vmatpush3.bf16.msra.mxu0 %v1640_v20  ;;  %1504 = vmatprep.mubr.msk.bf16.mxu0 %vm1907_vm0, %v1906_v1 }
 0x252   : > { %1502 = vmatprep.subr.bf16.mxu0 %v1906_v1 }
 0x255   : > { %1503 = vmatpush3.bf16.msra.mxu0 %v1641_v21 }
 0x256   : > { %1508 = vmatprep.subr.bf16.mxu0 %v1906_v1 }
 0x310   : > { %v823_v22 = vpop.f32.mrf.mxu0 }
 0x311   : > { %v829_v23 = vpack.c.bf16 %v823_v22, %v823_v22 }
 0x312   : > { %v1498_v24 = vpop.f32.mrf.mxu0 }
 0x313   : > { %1505 = vmatmul.mubr.msk.bf16.vlgmr.msra.gmra.mxu0 %vm853_vm4, %v829_v23 }
 0x314   : > { %v826_v25 = vpop.f32.mrf.mxu0  ;;  %1510 = vmatprep.mubr.msk.bf16.mxu0 %vm1907_vm0, %v1906_v1 }
 0x316   : > { %v1499_v26 = vpop.f32.mrf.mxu0 }
 0x3d3   : > { %v891_v29 = vpop.f32.mrf.mxu0 }
 0x3d4   : > { %v892_v30 = vadd.f32 %v1430_v28, %v891_v29 }
 0x3d5   : > { %v1506_v31 = vpop.f32.mrf.mxu0 }
 0x3d6   : > { %v897_v32 = vmax.f32 %v892_v30, 0.0 }
 0x3d7   : > { %v894_v33 = vpop.f32.mrf.mxu0 }
 0x3d8   : > { %v898_v34 = vpack.c.bf16 %v897_v32, %v897_v32 }
 0x3d9   : > { %v1507_v35 = vpop.f32.mrf.mxu0 }
 0x3da   : > { %v900_v36 = vsel %vm680_vm1, %v898_v34, 0 }
 0x3db   : > { %1509 = vmatpush3.bf16.msra.mxu0 %v900_v36 }
 0x3dc   : > { %1522 = vmatprep.subr.bf16.mxu0 %v1906_v1 }
 0x3de   : > { %1511 = vmatmul.mubr.msk.bf16.vlgmr.msra.gmra.mxu0 %vm676_vm2, %v2220_v3 }
 0x3df   : > { %1524 = vmatprep.mubr.msk.bf16.mxu0 %vm1907_vm0, %v1906_v1  ;;  %1523 = vmatpush3.bf16.msra.mxu0 %v1651_v50 }
 0x3e6   : > { %1525 = vmatmul.mubr.msk.bf16.vlgmr.msra.gmra.mxu0 %vm740_vm3, %v2218_v2 }
 0x49e   : > { %v936_v38 = vpop.f32.mrf.mxu0 }
 0x49f   : > { %v942_v40 = vpack.c.bf16 %v936_v38, %v936_v38 }
 0x4a0   : > { %v1512_v41 = vpop.f32.mrf.mxu0 }
 0x4a1   : > { %1519 = vmatmul.mubr.msk.bf16.vlgmr.msra.gmra.mxu1 %vm853_vm4, %v942_v40 }
 0x4a2   : > { %v939_v42 = vpop.f32.mrf.mxu0  ;;  %1529 = vmatpush3.bf16.msra.mxu1 %v1644_v39  ;;  %1544 = vmatprep.mubr.msk.bf16.mxu1 %vm1907_vm0, %v1906_v1 }
 0x4a3   : > { %1530 = vmatprep.subr.bf16.mxu1 %v1906_v1 }
 0x4a4   : > { %v1513_v44 = vpop.f32.mrf.mxu0 }
 0x4a6   : > { %1531 = vmatpush3.bf16.msra.mxu1 %v1645_v43  ;;  %v1070_v59 = vpop.f32.mrf.mxu0 }
 0x4a7   : > { %1532 = vmatprep.subr.bf16.mxu1 %v1906_v1 }
 0x4a8   : > { %v1526_v60 = vpop.f32.mrf.mxu0 }
 0x4aa   : > { %1533 = vmatpush3.bf16.msra.mxu1 %v1646_v45  ;;  %v1073_v61 = vpop.f32.mrf.mxu0 }
 0x4ab   : > { %1534 = vmatprep.subr.bf16.mxu1 %v1906_v1 }
 0x4ac   : > { %v1527_v62 = vpop.f32.mrf.mxu0 }
 0x4ae   : > { %1535 = vmatpush3.bf16.msra.mxu1 %v1647_v46 }
 0x4af   : > { %1536 = vmatprep.subr.bf16.mxu1 %v1906_v1 }
 0x4b2   : > { %1537 = vmatpush3.bf16.msra.mxu1 %v1648_v47 }
 0x4b3   : > { %1538 = vmatprep.subr.bf16.mxu1 %v1906_v1 }
 0x4b6   : > { %1539 = vmatpush3.bf16.msra.mxu1 %v1649_v48 }
 0x4b7   : > { %1540 = vmatprep.subr.bf16.mxu1 %v1906_v1 }
 0x4ba   : > { %1541 = vmatpush3.bf16.msra.mxu1 %v1650_v49 }
 0x4bb   : > { %1542 = vmatprep.subr.bf16.mxu1 %v1906_v1 }
 0x4be   : > { %1543 = vmatpush3.bf16.msra.mxu1 %v1652_v51 }
 0x561   : > { %v1003_v53 = vpop.f32.mrf.mxu1 }
 0x562   : > { %v1004_v54 = vadd.f32 %v1435_v52, %v1003_v53 }
 0x563   : > { %v1520_v55 = vpop.f32.mrf.mxu1 }
 0x564   : > { %v1009_v56 = vpack.c.bf16 %v1004_v54, %v1004_v54 }
 0x565   : > { %v1006_v57 = vpop.f32.mrf.mxu1 }
 0x566   : > { %1545 = vmatmul.mubr.bf16.vlgmr.msra.gmra.mxu1 %v1009_v56 }
 0x567   : > { %v1521_v58 = vpop.f32.mrf.mxu1 }
 0x626   : > { %v1158_v63 = vpop.f32.mrf.mxu1 }
 0x627   : > { %v1159_v1 = vadd.f32 %v1158_v63, %v1070_v59 }
 0x628   : > { %v1546_v2 = vpop.f32.mrf.mxu1 }
 0x629   : > { %v1171_v3 = vadd.f32 %v1449_v0, %v1159_v1 }
 0x62a   : > { %v1161_v4 = vpop.f32.mrf.mxu1 }
 0x62b   : > { %1653 = vtanh.f32 %v1171_v3 }
 0x62c   : > { %v1547_v5 = vpop.f32.mrf.mxu1 }
 0x638   : > { %v1654_v7 = vpop.eup %1653 }
 0x639   : > { %v1180_v8 = vmul.f32 %v1654_v7, %v1450_v6 }
 0x63b   : > { %v1181_v9 = vsel %vm853_vm4, %v1180_v8, 0.0 }
 0x63c   : > { %1182 = vadd.xlane.f32.xlu0 %v1181_v9 }
 0x6c5   : > { %v1183_v12 = vpop.xlane.xlu0 %1182 }
 0x6c6   : > { %v1191_v13 = vadd.f32 %v1451_v11, %v1183_v12 }
 0x6c8   : > { %1197 = vperm.xlu0 %1638, %v1191_v13  }
 0x743   : > { %v1198_v16 = vpop.permute.xlu0 %1197 }
 0x744   : > { %v1200_v17 = vsel %vm1194_vm5, %v1198_v16, %v1004_v54 }
 0x745   : > { %1201 = vst [vmem:[%s672_s1] sm:$0xff] %v1200_v17 }
 0x746 PF: > { %s2396_s30 = sld [smem:[#allocation20_spill]]  ;;  %s2399_s27 = smov %s1887_s28 }
 0x747   : > { %s2397_s18 = sld [smem:[#allocation19_spill]] }
 0x748   : > { %s2398_s29 = sld [smem:[#allocation21_spill]] }
 0x74c   : > { %p32_p6 = scmp.ge.s32.totalorder %s2396_s30, 4  }
 0x74d   : > { %s2400_s28 = smov %s2397_s18 }
 0x74e   :  { %34 = sbr.rel (!%p32_p6) target bundleno = 15 (0xf), region = 173 }
 0x753   :  { %1221 = vsyncpa [#allocation4], 1 }
 0x754   :  { %1223 = vsyncpa [#allocation4 + $0x1], 1 }
 0x755   :  { %1224 = vsyncpa [#allocation6], 1 }
 0x756   :  { %1226 = vsyncpa [#allocation6 + $0x1], 1 }
 0x757   :  { %1227 = vsyncpa [#allocation9], 1 }
 0x758   :  { %1229 = vsyncpa [#allocation9 + $0x1], 1 }
 0x759   :  { %1230 = vsyncpa [#allocation12], 1 }

</bundles_post_ra>
